<compile_context>
chip_gen: v5e
topology: v5e:2x2
jax: 0.10.0
libtpu: 0.0.40
codegen_flags: <defaults>
</compile_context>

<pallas_src>
import jax
import jax.numpy as jnp
from jax.experimental import pallas as pl
from jax.experimental.pallas import tpu as pltpu


# ----------------------------------------------------------------------------
# Kernel 1: batched input-gate projections + serial GRU recurrence (fori_loop).
# ----------------------------------------------------------------------------
def _gru_recurrence_kernel(x_ref,      # VMEM (T, H)   bf16  relu'd later; raw embedded rows
                           h0_ref,     # VMEM (1, H)   f32   initial hidden
                           wih_ref,    # VMEM (3, H, H) bf16 input weights  [r|z|n]
                           whh_ref,    # VMEM (3, H, H) bf16 hidden weights [r|z|n]
                           bias_ref,   # VMEM (4, H)   f32   [b_ir+b_hr, b_iz+b_hz, b_in, b_hn]
                           hs_ref,     # out  (T, H)   f32   all hidden states h_1..h_T
                           hfin_ref,   # out  (1, H)   f32   final hidden
                           ir_scr,     # VMEM (T, H)   f32
                           iz_scr,     # VMEM (T, H)   f32
                           in_scr):    # VMEM (T, H)   f32
    seq_len = x_ref.shape[0]

    # ---- Batched prologue (no serial dependence): ReLU + input gate projections.
    xg = jnp.maximum(x_ref[...], 0).astype(jnp.bfloat16)                       # (T, H)
    ir_scr[...] = (jnp.dot(xg, wih_ref[0], preferred_element_type=jnp.float32)
                   + bias_ref[0:1, :])
    iz_scr[...] = (jnp.dot(xg, wih_ref[1], preferred_element_type=jnp.float32)
                   + bias_ref[1:2, :])
    in_scr[...] = (jnp.dot(xg, wih_ref[2], preferred_element_type=jnp.float32)
                   + bias_ref[2:3, :])

    b_hn = bias_ref[3:4, :]                                                    # (1, H), hoisted

    # ---- Serial recurrence: only the three (1,H)@(H,H) h-side matvecs per step.
    def step(t, h):
        hb = h.astype(jnp.bfloat16)
        h_r = jnp.dot(hb, whh_ref[0], preferred_element_type=jnp.float32)
        h_z = jnp.dot(hb, whh_ref[1], preferred_element_type=jnp.float32)
        h_n = jnp.dot(hb, whh_ref[2], preferred_element_type=jnp.float32)
        r = jax.nn.sigmoid(ir_scr[pl.ds(t, 1), :] + h_r)
        z = jax.nn.sigmoid(iz_scr[pl.ds(t, 1), :] + h_z)
        n = jnp.tanh(in_scr[pl.ds(t, 1), :] + r * (h_n + b_hn))
        h_new = (1.0 - z) * n + z * h                                          # (1, H) f32
        hs_ref[pl.ds(t, 1), :] = h_new
        return h_new

    h_last = jax.lax.fori_loop(0, seq_len, step, h0_ref[...],
                               unroll=(seq_len <= 32))
    hfin_ref[...] = h_last                                                     # written once


def _gru_recurrence(x_emb, h0, w_ih, w_hh, bias):
    T, H = x_emb.shape
    return pl.pallas_call(
        _gru_recurrence_kernel,
        out_shape=(jax.ShapeDtypeStruct((T, H), jnp.float32),
                   jax.ShapeDtypeStruct((1, H), jnp.float32)),
        grid=(1,),
        in_specs=[
            pl.BlockSpec((T, H),    lambda i: (0, 0)),
            pl.BlockSpec((1, H),    lambda i: (0, 0)),
            pl.BlockSpec((3, H, H), lambda i: (0, 0, 0)),
            pl.BlockSpec((3, H, H), lambda i: (0, 0, 0)),
            pl.BlockSpec((4, H),    lambda i: (0, 0)),
        ],
        out_specs=(pl.BlockSpec((T, H), lambda i: (0, 0)),
                   pl.BlockSpec((1, H), lambda i: (0, 0))),
        scratch_shapes=[pltpu.VMEM((T, H), jnp.float32)] * 3,
        compiler_params=pltpu.CompilerParams(
            dimension_semantics=("arbitrary",),
            vmem_limit_bytes=32 * 1024 * 1024),   # raise at production H
    )(x_emb, h0, w_ih, w_hh, bias)


# ----------------------------------------------------------------------------
# Kernel 2: batched output projection, w_out tiled over V, online log-sum-exp.
# ----------------------------------------------------------------------------
def _logits_lse_kernel(hs_ref,      # VMEM (tT, H)  f32
                       wout_ref,    # VMEM (H, tV)  bf16  (V tile)
                       bout_ref,    # VMEM (1, tV)  f32   (padded cols = -1e30)
                       logits_ref,  # out  (tT, tV) f32
                       lse_ref,     # out  (tT, 1)  f32   (resident over V tiles)
                       m_scr,       # VMEM (tT, 1)  f32
                       l_scr):      # VMEM (tT, 1)  f32
    j = pl.program_id(1)

    @pl.when(j == 0)
    def _():
        m_scr[...] = jnp.full_like(m_scr, -jnp.inf)
        l_scr[...] = jnp.zeros_like(l_scr)

    logits = (jnp.dot(hs_ref[...].astype(jnp.bfloat16), wout_ref[...],
                      preferred_element_type=jnp.float32) + bout_ref[...])     # (tT, tV)
    logits_ref[...] = logits

    m_prev = m_scr[...]
    m_new = jnp.maximum(m_prev, jnp.max(logits, axis=1, keepdims=True))
    l_scr[...] = (l_scr[...] * jnp.exp(m_prev - m_new)
                  + jnp.sum(jnp.exp(logits - m_new), axis=1, keepdims=True))
    m_scr[...] = m_new

    @pl.when(j == pl.num_programs(1) - 1)
    def _():
        lse_ref[...] = m_scr[...] + jnp.log(l_scr[...])


# ----------------------------------------------------------------------------
# Kernel 3: logp = logits - lse (embarrassingly parallel, lane-dense stores).
# ----------------------------------------------------------------------------
def _logp_kernel(logits_ref, lse_ref, logp_ref):
    logp_ref[...] = logits_ref[...] - lse_ref[...]


def _project_logsoftmax(hs, w_out_p, b_out_p):
    T, H = hs.shape
    Vp = w_out_p.shape[1]
    # Tile sizes (degenerate to full extents at demo sizes; tile at production).
    tT = T if (T <= 256 or T % 256) else 256
    tV = Vp if (Vp <= 2048 or Vp % 2048) else 2048
    nT, nV = T // tT, Vp // tV

    logits, lse = pl.pallas_call(
        _logits_lse_kernel,
        out_shape=(jax.ShapeDtypeStruct((T, Vp), jnp.float32),
                   jax.ShapeDtypeStruct((T, 1), jnp.float32)),
        grid=(nT, nV),
        in_specs=[
            pl.BlockSpec((tT, H), lambda i, j: (i, 0)),
            pl.BlockSpec((H, tV), lambda i, j: (0, j)),
            pl.BlockSpec((1, tV), lambda i, j: (0, j)),
        ],
        out_specs=(pl.BlockSpec((tT, tV), lambda i, j: (i, j)),
                   pl.BlockSpec((tT, 1),  lambda i, j: (i, 0))),
        scratch_shapes=[pltpu.VMEM((tT, 1), jnp.float32),
                        pltpu.VMEM((tT, 1), jnp.float32)],
        compiler_params=pltpu.CompilerParams(
            dimension_semantics=("parallel", "arbitrary"),
            vmem_limit_bytes=32 * 1024 * 1024),
    )(hs, w_out_p, b_out_p)

    logp = pl.pallas_call(
        _logp_kernel,
        out_shape=jax.ShapeDtypeStruct((T, Vp), jnp.float32),
        grid=(nT, nV),
        in_specs=[pl.BlockSpec((tT, tV), lambda i, j: (i, j)),
                  pl.BlockSpec((tT, 1),  lambda i, j: (i, 0))],
        out_specs=pl.BlockSpec((tT, tV), lambda i, j: (i, j)),
        compiler_params=pltpu.CompilerParams(
            dimension_semantics=("parallel", "parallel")),
    )(logits, lse)
    return logp


# ----------------------------------------------------------------------------
# Wrapper: T fused decoder steps (== T sequential PyTorch forward() calls).
# ----------------------------------------------------------------------------
def decoder_rnn_decode(tokens, h0, emb_table, w_ih, w_hh, bias, w_out_p, b_out_p, v_real):
    """tokens:(T,) int32  h0:(1,H) f32  emb:(V,H) bf16  w_ih/w_hh:(3,H,H) bf16
    bias:(4,H) f32  w_out_p:(H,Vp) bf16  b_out_p:(1,Vp) f32 ->
    (logp:(T,V) f32, h_final:(1,H) f32)."""
    # Token ids are known up front (teacher forcing): single gather, off the
    # serial path (replaces the previous per-step embedding-row DMA gather).
    x_emb = jnp.take(emb_table, tokens, axis=0)                   # (T, H) bf16
    hs, h_final = _gru_recurrence(x_emb, h0, w_ih, w_hh, bias)
    logp_p = _project_logsoftmax(hs, w_out_p, b_out_p)            # (T, Vp)
    return logp_p[:, :v_real], h_final


class DecoderRNN:
    """JAX/Pallas port of the PyTorch DecoderRNN (inference forward).

    NOTE: when loading real PyTorch checkpoints, weight_ih/hh_l0 are (3H,H) and
    applied transposed; transpose + split into the (3,H,H) gate stack here.
    """

    def __init__(self, hidden_size, output_size, key):
        self.hidden_size = hidden_size
        self.output_size = output_size
        H, V = hidden_size, output_size
        k = jax.random.split(key, 7)
        s = 1.0 / (H ** 0.5)

        # Embedding table (V, H) ~ N(0,1) like nn.Embedding default, stored bf16.
        self.embedding = jax.random.normal(k[0], (V, H), jnp.float32).astype(jnp.bfloat16)

        # GRU params, gate-stacked on the leading axis, PyTorch order [r, z, n].
        self.w_ih = jax.random.uniform(k[1], (3, H, H), jnp.float32, -s, s).astype(jnp.bfloat16)
        self.w_hh = jax.random.uniform(k[2], (3, H, H), jnp.float32, -s, s).astype(jnp.bfloat16)
        b_ih = jax.random.uniform(k[3], (3, H), jnp.float32, -s, s)
        b_hh = jax.random.uniform(k[4], (3, H), jnp.float32, -s, s)
        # Fold biases: r/z gates pre-sum b_ih+b_hh; n gate keeps them split.
        self.bias = jnp.stack([b_ih[0] + b_hh[0],
                               b_ih[1] + b_hh[1],
                               b_ih[2],
                               b_hh[2]], axis=0)                  # (4, H) f32

        # Output Linear stored as (H, V) for h @ W; bf16 weights, f32 bias.
        self.w_out = jax.random.uniform(k[5], (H, V), jnp.float32, -s, s).astype(jnp.bfloat16)
        self.b_out = jax.random.uniform(k[6], (1, V), jnp.float32, -s, s)

        # Lane-padded projection params (V -> multiple of 128) for lane-dense
        # stores; padded columns get zero weights and -1e30 bias so they never
        # contribute to the max / log-sum-exp.
        Vp = ((V + 127) // 128) * 128
        self.Vp = Vp
        self.w_out_p = jnp.zeros((H, Vp), jnp.bfloat16).at[:, :V].set(self.w_out)
        self.b_out_p = jnp.full((1, Vp), -1e30, jnp.float32).at[:, :V].set(self.b_out)

        self.hidden = None

    def initHidden(self):
        # PyTorch keeps hidden as (num_layers=1, batch=1, H); we keep (1, H).
        self.hidden = jnp.zeros((1, self.hidden_size), jnp.float32)
        return self.hidden

    def decode(self, tokens):
        """Run T fused decoder steps (teacher forcing); returns (T, V) log-probs."""
        toks = jnp.asarray(tokens).reshape(-1).astype(jnp.int32)
        logp, h_new = decoder_rnn_decode(toks, self.hidden, self.embedding,
                                         self.w_ih, self.w_hh, self.bias,
                                         self.w_out_p, self.b_out_p,
                                         self.output_size)
        self.hidden = h_new
        return logp

    def forward(self, x):
        """Single step, same signature as the PyTorch module: returns (1, V) log-probs."""
        return self.decode(jnp.asarray(x).reshape((1,)))


def _reference_decode(tokens, h0, emb_table, w_ih, w_hh, bias, w_out, b_out):
    """Pure-JAX reference mirroring the kernel math (bf16 weights, f32 accumulation)."""
    T = tokens.shape[0]
    h = h0
    outs = []
    for t in range(T):
        e = emb_table[tokens[t]][None, :]                          # (1, H) bf16
        x = jnp.maximum(e, 0).astype(jnp.bfloat16)
        i_r = jnp.dot(x, w_ih[0], preferred_element_type=jnp.float32) + bias[0:1]
        i_z = jnp.dot(x, w_ih[1], preferred_element_type=jnp.float32) + bias[1:2]
        i_n = jnp.dot(x, w_ih[2], preferred_element_type=jnp.float32) + bias[2:3]
        hb = h.astype(jnp.bfloat16)
        h_r = jnp.dot(hb, w_hh[0], preferred_element_type=jnp.float32)
        h_z = jnp.dot(hb, w_hh[1], preferred_element_type=jnp.float32)
        h_n = jnp.dot(hb, w_hh[2], preferred_element_type=jnp.float32)
        r = jax.nn.sigmoid(i_r + h_r)
        z = jax.nn.sigmoid(i_z + h_z)
        n = jnp.tanh(i_n + r * (h_n + bias[3:4]))
        h = (1.0 - z) * n + z * h
        logits = jnp.dot(h.astype(jnp.bfloat16), w_out,
                         preferred_element_type=jnp.float32) + b_out
        outs.append(jax.nn.log_softmax(logits, axis=1))
    return jnp.concatenate(outs, axis=0), h


if __name__ == "__main__":
    key = jax.random.PRNGKey(0)
    hidden_size = 32
    output_size = 64
    seq_len = 8

    k_model, k_tok = jax.random.split(key)
    dec = DecoderRNN(hidden_size, output_size, k_model)
    tokens = jax.random.randint(k_tok, (seq_len,), 0, output_size, dtype=jnp.int32)

    # --- Single-step forward (matches the PyTorch module's forward signature) ---
    dec.initHidden()
    logp1 = jax.block_until_ready(dec.forward(tokens[0]))
    assert logp1.shape == (1, output_size)

    # --- Fused multi-step decode ---
    dec.initHidden()
    logp_seq = jax.block_until_ready(dec.decode(tokens))
    h_final = jax.block_until_ready(dec.hidden)
    assert logp_seq.shape == (seq_len, output_size)
    assert h_final.shape == (1, hidden_size)

    # Correctness vs pure-JAX reference (same bf16-weight / f32-accum math).
    ref_logp, ref_h = _reference_decode(tokens, jnp.zeros((1, hidden_size), jnp.float32),
                                        dec.embedding, dec.w_ih, dec.w_hh, dec.bias,
                                        dec.w_out, dec.b_out)
    assert jnp.allclose(logp_seq, ref_logp, atol=1e-2, rtol=1e-2)
    assert jnp.allclose(h_final, ref_h, atol=1e-2, rtol=1e-2)
    assert jnp.allclose(logp1, ref_logp[0:1], atol=1e-2, rtol=1e-2)
    # log-softmax sanity: each row sums to 1 in probability space.
    assert jnp.allclose(jnp.sum(jnp.exp(logp_seq), axis=1), 1.0, atol=1e-4)

    print("KERNEL_OK")
</pallas_src>

<mosaic_0001>
module attributes {stable_mosaic.version = 11 : i64} {
  func.func @_gru_recurrence_kernel(%arg0: i32, %arg1: memref<1x32xbf16, #tpu.memory_space<vmem>>, %arg2: memref<1x32xf32, #tpu.memory_space<vmem>>, %arg3: memref<3x32x32xbf16, #tpu.memory_space<vmem>>, %arg4: memref<3x32x32xbf16, #tpu.memory_space<vmem>>, %arg5: memref<4x32xf32, #tpu.memory_space<vmem>>, %arg6: memref<1x32xf32, #tpu.memory_space<vmem>>, %arg7: memref<1x32xf32, #tpu.memory_space<vmem>>, %arg8: memref<1x32xf32, #tpu.memory_space<vmem>>, %arg9: memref<1x32xf32, #tpu.memory_space<vmem>>, %arg10: memref<1x32xf32, #tpu.memory_space<vmem>>) attributes {dimension_semantics = [#tpu.dimension_semantics<arbitrary>], iteration_bounds = array<i64: 1>, scalar_prefetch = 0 : i64, scratch_operands = 3 : i64, tpu.core_type = #tpu.core_type<tc>, window_params = [{pipeline_mode = #tpu.pipeline_mode<synchronous>, transform_indices = @transform_0, window_bounds = array<i64: 1, 32>}, {pipeline_mode = #tpu.pipeline_mode<synchronous>, transform_indices = @transform_1, window_bounds = array<i64: 1, 32>}, {pipeline_mode = #tpu.pipeline_mode<synchronous>, transform_indices = @transform_2, window_bounds = array<i64: 3, 32, 32>}, {pipeline_mode = #tpu.pipeline_mode<synchronous>, transform_indices = @transform_3, window_bounds = array<i64: 3, 32, 32>}, {pipeline_mode = #tpu.pipeline_mode<synchronous>, transform_indices = @transform_4, window_bounds = array<i64: 4, 32>}, {pipeline_mode = #tpu.pipeline_mode<synchronous>, transform_indices = @transform_5, window_bounds = array<i64: 1, 32>}, {pipeline_mode = #tpu.pipeline_mode<synchronous>, transform_indices = @transform_6, window_bounds = array<i64: 1, 32>}]} {
    %c0 = arith.constant 0 : index
    %c0_0 = arith.constant 0 : index
    %0 = vector.load %arg1[%c0, %c0_0] : memref<1x32xbf16, #tpu.memory_space<vmem>>, vector<1x32xbf16>
    %cst = arith.constant 0.000000e+00 : bf16
    %1 = vector.broadcast %cst : bf16 to vector<1x32xbf16>
    %2 = arith.maximumf %0, %1 : vector<1x32xbf16>
    %c0_1 = arith.constant 0 : index
    %c0_2 = arith.constant 0 : index
    %c0_3 = arith.constant 0 : index
    %3 = vector.load %arg3[%c0_1, %c0_2, %c0_3] : memref<3x32x32xbf16, #tpu.memory_space<vmem>>, vector<1x32x32xbf16>
    %4 = vector.shape_cast %3 : vector<1x32x32xbf16> to vector<32x32xbf16>
    %cst_4 = arith.constant dense<0.000000e+00> : vector<1x32xf32>
    %5 = tpu.matmul %2, %4, %cst_4 {dimension_numbers = #tpu.dot_dimension_numbers<[1], [0], [0], [1], [0, 0, 1, 1], [], []>} : vector<1x32xbf16>, vector<32x32xbf16>, vector<1x32xf32> -> vector<1x32xf32>
    %c0_5 = arith.constant 0 : index
    %c0_6 = arith.constant 0 : index
    %6 = vector.load %arg5[%c0_5, %c0_6] : memref<4x32xf32, #tpu.memory_space<vmem>>, vector<1x32xf32>
    %7 = arith.addf %5, %6 : vector<1x32xf32>
    %c0_7 = arith.constant 0 : index
    %c0_8 = arith.constant 0 : index
    %8 = vector.load %arg8[%c0_7, %c0_8] : memref<1x32xf32, #tpu.memory_space<vmem>>, vector<1x32xf32>
    tpu.vector_store %arg8[%c0_7, %c0_8], %7 {strides = array<i32>} : memref<1x32xf32, #tpu.memory_space<vmem>>, vector<1x32xf32>,
    %c1 = arith.constant 1 : index
    %c0_9 = arith.constant 0 : index
    %c0_10 = arith.constant 0 : index
    %9 = vector.load %arg3[%c1, %c0_9, %c0_10] : memref<3x32x32xbf16, #tpu.memory_space<vmem>>, vector<1x32x32xbf16>
    %10 = vector.shape_cast %9 : vector<1x32x32xbf16> to vector<32x32xbf16>
    %cst_11 = arith.constant dense<0.000000e+00> : vector<1x32xf32>
    %11 = tpu.matmul %2, %10, %cst_11 {dimension_numbers = #tpu.dot_dimension_numbers<[1], [0], [0], [1], [0, 0, 1, 1], [], []>} : vector<1x32xbf16>, vector<32x32xbf16>, vector<1x32xf32> -> vector<1x32xf32>
    %c1_12 = arith.constant 1 : index
    %c0_13 = arith.constant 0 : index
    %12 = vector.load %arg5[%c1_12, %c0_13] : memref<4x32xf32, #tpu.memory_space<vmem>>, vector<1x32xf32>
    %13 = arith.addf %11, %12 : vector<1x32xf32>
    %c0_14 = arith.constant 0 : index
    %c0_15 = arith.constant 0 : index
    %14 = vector.load %arg9[%c0_14, %c0_15] : memref<1x32xf32, #tpu.memory_space<vmem>>, vector<1x32xf32>
    tpu.vector_store %arg9[%c0_14, %c0_15], %13 {strides = array<i32>} : memref<1x32xf32, #tpu.memory_space<vmem>>, vector<1x32xf32>,
    %c2 = arith.constant 2 : index
    %c0_16 = arith.constant 0 : index
    %c0_17 = arith.constant 0 : index
    %15 = vector.load %arg3[%c2, %c0_16, %c0_17] : memref<3x32x32xbf16, #tpu.memory_space<vmem>>, vector<1x32x32xbf16>
    %16 = vector.shape_cast %15 : vector<1x32x32xbf16> to vector<32x32xbf16>
    %cst_18 = arith.constant dense<0.000000e+00> : vector<1x32xf32>
    %17 = tpu.matmul %2, %16, %cst_18 {dimension_numbers = #tpu.dot_dimension_numbers<[1], [0], [0], [1], [0, 0, 1, 1], [], []>} : vector<1x32xbf16>, vector<32x32xbf16>, vector<1x32xf32> -> vector<1x32xf32>
    %c2_19 = arith.constant 2 : index
    %c0_20 = arith.constant 0 : index
    %18 = vector.load %arg5[%c2_19, %c0_20] : memref<4x32xf32, #tpu.memory_space<vmem>>, vector<1x32xf32>
    %19 = arith.addf %17, %18 : vector<1x32xf32>
    %c0_21 = arith.constant 0 : index
    %c0_22 = arith.constant 0 : index
    %20 = vector.load %arg10[%c0_21, %c0_22] : memref<1x32xf32, #tpu.memory_space<vmem>>, vector<1x32xf32>
    tpu.vector_store %arg10[%c0_21, %c0_22], %19 {strides = array<i32>} : memref<1x32xf32, #tpu.memory_space<vmem>>, vector<1x32xf32>,
    %c3 = arith.constant 3 : index
    %c0_23 = arith.constant 0 : index
    %21 = vector.load %arg5[%c3, %c0_23] : memref<4x32xf32, #tpu.memory_space<vmem>>, vector<1x32xf32>
    %c0_24 = arith.constant 0 : index
    %c0_25 = arith.constant 0 : index
    %22 = vector.load %arg2[%c0_24, %c0_25] : memref<1x32xf32, #tpu.memory_space<vmem>>, vector<1x32xf32>
    %c0_i32 = arith.constant 0 : i32
    %23 = arith.truncf %22 : vector<1x32xf32> to vector<1x32xbf16>
    %c0_26 = arith.constant 0 : index
    %c0_27 = arith.constant 0 : index
    %c0_28 = arith.constant 0 : index
    %24 = vector.load %arg4[%c0_26, %c0_27, %c0_28] : memref<3x32x32xbf16, #tpu.memory_space<vmem>>, vector<1x32x32xbf16>
    %25 = vector.shape_cast %24 : vector<1x32x32xbf16> to vector<32x32xbf16>
    %cst_29 = arith.constant dense<0.000000e+00> : vector<1x32xf32>
    %26 = tpu.matmul %23, %25, %cst_29 {dimension_numbers = #tpu.dot_dimension_numbers<[1], [0], [0], [1], [0, 0, 1, 1], [], []>} : vector<1x32xbf16>, vector<32x32xbf16>, vector<1x32xf32> -> vector<1x32xf32>
    %c1_30 = arith.constant 1 : index
    %c0_31 = arith.constant 0 : index
    %c0_32 = arith.constant 0 : index
    %27 = vector.load %arg4[%c1_30, %c0_31, %c0_32] : memref<3x32x32xbf16, #tpu.memory_space<vmem>>, vector<1x32x32xbf16>
    %28 = vector.shape_cast %27 : vector<1x32x32xbf16> to vector<32x32xbf16>
    %cst_33 = arith.constant dense<0.000000e+00> : vector<1x32xf32>
    %29 = tpu.matmul %23, %28, %cst_33 {dimension_numbers = #tpu.dot_dimension_numbers<[1], [0], [0], [1], [0, 0, 1, 1], [], []>} : vector<1x32xbf16>, vector<32x32xbf16>, vector<1x32xf32> -> vector<1x32xf32>
    %c2_34 = arith.constant 2 : index
    %c0_35 = arith.constant 0 : index
    %c0_36 = arith.constant 0 : index
    %30 = vector.load %arg4[%c2_34, %c0_35, %c0_36] : memref<3x32x32xbf16, #tpu.memory_space<vmem>>, vector<1x32x32xbf16>
    %31 = vector.shape_cast %30 : vector<1x32x32xbf16> to vector<32x32xbf16>
    %cst_37 = arith.constant dense<0.000000e+00> : vector<1x32xf32>
    %32 = tpu.matmul %23, %31, %cst_37 {dimension_numbers = #tpu.dot_dimension_numbers<[1], [0], [0], [1], [0, 0, 1, 1], [], []>} : vector<1x32xbf16>, vector<32x32xbf16>, vector<1x32xf32> -> vector<1x32xf32>
    %33 = arith.index_cast %c0_i32 : i32 to index
    %c0_38 = arith.constant 0 : index
    %34 = vector.load %arg8[%33, %c0_38] : memref<1x32xf32, #tpu.memory_space<vmem>>, vector<1x32xf32>
    %35 = arith.addf %34, %26 : vector<1x32xf32>
    %36 = arith.negf %35 : vector<1x32xf32>
    %37 = math.exp %36 : vector<1x32xf32>
    %cst_39 = arith.constant 1.000000e+00 : f32
    %38 = vector.broadcast %cst_39 : f32 to vector<1x32xf32>
    %39 = arith.addf %38, %37 : vector<1x32xf32>
    %40 = arith.divf %38, %39 : vector<1x32xf32>
    %41 = arith.index_cast %c0_i32 : i32 to index
    %c0_40 = arith.constant 0 : index
    %42 = vector.load %arg9[%41, %c0_40] : memref<1x32xf32, #tpu.memory_space<vmem>>, vector<1x32xf32>
    %43 = arith.addf %42, %29 : vector<1x32xf32>
    %44 = arith.negf %43 : vector<1x32xf32>
    %45 = math.exp %44 : vector<1x32xf32>
    %cst_41 = arith.constant 1.000000e+00 : f32
    %46 = vector.broadcast %cst_41 : f32 to vector<1x32xf32>
    %47 = arith.addf %46, %45 : vector<1x32xf32>
    %48 = arith.divf %46, %47 : vector<1x32xf32>
    %49 = arith.index_cast %c0_i32 : i32 to index
    %c0_42 = arith.constant 0 : index
    %50 = vector.load %arg10[%49, %c0_42] : memref<1x32xf32, #tpu.memory_space<vmem>>, vector<1x32xf32>
    %51 = arith.addf %32, %21 : vector<1x32xf32>
    %52 = arith.mulf %40, %51 : vector<1x32xf32>
    %53 = arith.addf %50, %52 : vector<1x32xf32>
    %54 = math.tanh %53 : vector<1x32xf32>
    %cst_43 = arith.constant 1.000000e+00 : f32
    %55 = vector.broadcast %cst_43 : f32 to vector<1x32xf32>
    %56 = arith.subf %55, %48 : vector<1x32xf32>
    %57 = arith.mulf %56, %54 : vector<1x32xf32>
    %58 = arith.mulf %48, %22 : vector<1x32xf32>
    %59 = arith.addf %57, %58 : vector<1x32xf32>
    %60 = arith.index_cast %c0_i32 : i32 to index
    %c0_44 = arith.constant 0 : index
    %61 = vector.load %arg6[%60, %c0_44] : memref<1x32xf32, #tpu.memory_space<vmem>>, vector<1x32xf32>
    tpu.vector_store %arg6[%60, %c0_44], %59 {strides = array<i32>} : memref<1x32xf32, #tpu.memory_space<vmem>>, vector<1x32xf32>,
    %c1_i32 = arith.constant 1 : i32
    %c0_45 = arith.constant 0 : index
    %c0_46 = arith.constant 0 : index
    %62 = vector.load %arg7[%c0_45, %c0_46] : memref<1x32xf32, #tpu.memory_space<vmem>>, vector<1x32xf32>
    tpu.vector_store %arg7[%c0_45, %c0_46], %59 {strides = array<i32>} : memref<1x32xf32, #tpu.memory_space<vmem>>, vector<1x32xf32>,
    return
  }
  func.func @transform_0(%arg0: i32) -> (i32, i32) {
    %c0_i32 = arith.constant 0 : i32
    %c0_i32_0 = arith.constant 0 : i32
    %c0_i32_1 = arith.constant 0 : i32
    return %c0_i32, %c0_i32_0 : i32, i32
  }
  func.func @transform_1(%arg0: i32) -> (i32, i32) {
    %c0_i32 = arith.constant 0 : i32
    %c0_i32_0 = arith.constant 0 : i32
    %c0_i32_1 = arith.constant 0 : i32
    return %c0_i32, %c0_i32_0 : i32, i32
  }
  func.func @transform_2(%arg0: i32) -> (i32, i32, i32) {
    %c0_i32 = arith.constant 0 : i32
    %c0_i32_0 = arith.constant 0 : i32
    %c0_i32_1 = arith.constant 0 : i32
    %c0_i32_2 = arith.constant 0 : i32
    return %c0_i32, %c0_i32_0, %c0_i32_1 : i32, i32, i32
  }
  func.func @transform_3(%arg0: i32) -> (i32, i32, i32) {
    %c0_i32 = arith.constant 0 : i32
    %c0_i32_0 = arith.constant 0 : i32
    %c0_i32_1 = arith.constant 0 : i32
    %c0_i32_2 = arith.constant 0 : i32
    return %c0_i32, %c0_i32_0, %c0_i32_1 : i32, i32, i32
  }
  func.func @transform_4(%arg0: i32) -> (i32, i32) {
    %c0_i32 = arith.constant 0 : i32
    %c0_i32_0 = arith.constant 0 : i32
    %c0_i32_1 = arith.constant 0 : i32
    return %c0_i32, %c0_i32_0 : i32, i32
  }
  func.func @transform_5(%arg0: i32) -> (i32, i32) {
    %c0_i32 = arith.constant 0 : i32
    %c0_i32_0 = arith.constant 0 : i32
    %c0_i32_1 = arith.constant 0 : i32
    return %c0_i32, %c0_i32_0 : i32, i32
  }
  func.func @transform_6(%arg0: i32) -> (i32, i32) {
    %c0_i32 = arith.constant 0 : i32
    %c0_i32_0 = arith.constant 0 : i32
    %c0_i32_1 = arith.constant 0 : i32
    return %c0_i32, %c0_i32_0 : i32, i32
  }
}

</mosaic_0001>

<bundles_post_ra>
// kernel: tpu_custom_call.1
= control target key start
LH: loop header
LB: loop body
LE: loop exit
PB: predicated region body
PF: predicated region fallthrough
CT: control target
= control target key end

     0   :  { %12 = vsyncpa [#allocation6], 0  ;;  %s729_s0 = inlined_call_operand.hbm [shape: bf16[1,32], index: 0, kind: input, shape index: {}]   ;;  %s730_s1 = inlined_call_operand.hbm [shape: f32[1,32], index: 1, kind: input, shape index: {}]   ;;  %s731_s2 = inlined_call_operand.hbm [shape: bf16[3,32,32], index: 2, kind: input, shape index: {}]   ;;  %s732_s3 = inlined_call_operand.hbm [shape: bf16[3,32,32], index: 3, kind: input, shape index: {}]   ;;  %s733_s4 = inlined_call_operand.hbm [shape: f32[4,32], index: 4, kind: input, shape index: {}]   ;;  %s734_s5 = inlined_call_operand.hbm [shape: f32[1,32], index: 5, kind: output, shape index: {0}]   ;;  %s735_s6 = inlined_call_operand.hbm [shape: f32[1,32], index: 6, kind: output, shape index: {1}]  }
   0x1   :  { %13 = vsyncpa [#allocation9], 0 }
   0x2   :  { %14 = vsyncpa [#allocation12], 0 }
   0x3   :  { %15 = vsyncpa [#allocation7], 0  ;;  %s33_s23 = sshll.u32 %s730_s1, 4  ;;  %s34_s23 = int_to_ptr.hbm [resolvable:$true] %s33_s23 }
   0x4   :  { %16 = vsyncpa [#allocation16], 0  ;;  %s648_s24 = smov [#allocation8]   ;;  %s56_s28 = sshll.u32 %s732_s3, 4  ;;  %s57_s28 = int_to_ptr.hbm [resolvable:$true] %s56_s28 }
   0x5   :  { %s35_s25 = sshll.u32 %s648_s24, 4  ;;  %s649_s29 = smov [#allocation11]   ;;  %s36_s25 = int_to_ptr.vmem [resolvable:$true] %s35_s25 }
   0x6   :  { %38 = dma.hbm_to_vmem [thread:$0]  %s34_s23, 16, %s36_s25, [#allocation9]  }
   0x7   :  { %s58_s30 = sshll.u32 %s649_s29, 4  ;;  %s22_s9 = sshll.u32 %s729_s0, 4  ;;  %s59_s30 = int_to_ptr.vmem [resolvable:$true] %s58_s30  ;;  %s23_s9 = int_to_ptr.hbm [resolvable:$true] %s22_s9 }
   0x8   :  { %s650_s1 = smov 64   ;;  %s651_s10 = smov 4  }
   0x9   :  { %64 = dma.hbm_to_vmem [thread:$0]  %s57_s28, 768, %s59_s30, [#allocation12], %s650_s1, %s650_s1, %s651_s10  }
   0xa   :  { %s43_s13 = sshll.u32 %s731_s2, 4  ;;  %s652_s14 = smov [#allocation5]   ;;  %s44_s13 = int_to_ptr.hbm [resolvable:$true] %s43_s13 }
   0xb   :  { %s24_s15 = sshll.u32 %s652_s14, 4  ;;  %s653_s3 = smov [#allocation10]   ;;  %s25_s15 = int_to_ptr.vmem [resolvable:$true] %s24_s15 }
   0xc   :  { %27 = dma.hbm_to_vmem [thread:$0]  %s23_s9, 16, %s25_s15, [#allocation6]  }
   0xd   :  { %s45_s16 = sshll.u32 %s653_s3, 4  ;;  %s70_s0 = sshll.u32 %s733_s4, 4  ;;  %s46_s16 = int_to_ptr.vmem [resolvable:$true] %s45_s16  ;;  %s71_s0 = int_to_ptr.hbm [resolvable:$true] %s70_s0 }
   0xe   :  { %51 = dma.hbm_to_vmem [thread:$0]  %s44_s13, 768, %s46_s16, [#allocation9], %s650_s1, %s650_s1, %s651_s10  }
   0xf   :  { %s654_s19 = smov [#allocation13]  }
  0x10   :  { %s72_s20 = sshll.u32 %s654_s19, 4  ;;  %s73_s20 = int_to_ptr.vmem [resolvable:$true] %s72_s20 }
  0x11   :  { %75 = dma.hbm_to_vmem [thread:$0]  %s71_s0, 64, %s73_s20, [#allocation12]  }
  0x12   :  { %638 = dma.done.wait [#allocation6], 16  }
  0x13   :  { %639 = vsyncadd [#allocation6], 4294967280 }
  0x14   :  { %640 = dma.done.wait [#allocation9], 784  }
  0x15   :  { %641 = vsyncadd [#allocation9], 4294966512 }
  0x16   :  { %642 = dma.done.wait [#allocation12], 832  }
  0x17   :  { %643 = vsyncadd [#allocation12], 4294966464  ;;  %v440_v0 = vld [vmem:[#allocation10 + $0x8] sm:$0xff]  ;;  %v446_v1 = vld [vmem:[#allocation11 + $0x8] sm:$0xff]  ;;  %vm118_vm0 = vcmask 261120   ;;  %vm135_vm1 = vcmask 253952  }
  0x18   :  { %v442_v2 = vld [vmem:[#allocation10 + $0x18] sm:$0xff]  ;;  %v439_v3 = vld [vmem:[#allocation10] sm:$0xff]  ;;  %128 = vmatpush.bf16.msra.mxu0 %v440_v0  ;;  %229 = vmatpush.bf16.msra.mxu3 %v446_v1  ;;  %v445_v4 = vld [vmem:[#allocation11] sm:$0xff]  ;;  %s655_s2 = smov [#allocation14]   ;;  %s355_s23 = sshll.u32 %s734_s5, 4  ;;  %s356_s23 = int_to_ptr.hbm [resolvable:$true] %s355_s23 }
  0x19   :  { %v97_v5 = vld [vmem:[#allocation5] sm:$0x1]  ;;  %v707_v6 = vld [vmem:[#allocation8] sm:$0x1]  ;;  %161 = vmatpush.bf16.msra.mxu1 %v442_v2  ;;  %v441_v7 = vld [vmem:[#allocation10 + $0x10] sm:$0xff]  ;;  %s353_s4 = sshll.u32 %s655_s2, 4  ;;  %s354_s4 = int_to_ptr.vmem [resolvable:$true] %s353_s4 }
  0x1a   :  { %v98_v8 = vunpack.c.l.bf16 %v97_v5  ;;  %v448_v9 = vld [vmem:[#allocation11 + $0x18] sm:$0xff]  ;;  %v450_v11 = vld [vmem:[#allocation11 + $0x28] sm:$0xff]  ;;  %v203_v13 = vpack.c.bf16 %v707_v6, %v707_v6  ;;  %v443_v14 = vld [vmem:[#allocation10 + $0x20] sm:$0xff]  ;;  %s656_s24 = smov [#allocation15]   ;;  %s366_s28 = sshll.u32 %s735_s6, 4  ;;  %s367_s28 = int_to_ptr.hbm [resolvable:$true] %s366_s28 }
  0x1b   :  { %v444_v10 = vld [vmem:[#allocation10 + $0x28] sm:$0xff]  ;;  %v447_v16 = vld [vmem:[#allocation11 + $0x10] sm:$0xff]  ;;  %v449_v17 = vld [vmem:[#allocation11 + $0x20] sm:$0xff]  ;;  %s364_s25 = sshll.u32 %s656_s24, 4  ;;  %s365_s25 = int_to_ptr.vmem [resolvable:$true] %s364_s25 }
  0x1c   :  { %v99_v12 = vmax.f32 %v98_v8, 0.0  ;;  %193 = vmatpush.bf16.msra.mxu2 %v444_v10  ;;  %129 = vmatpush.bf16.msra.mxu0 %v439_v3  ;;  %v105_v18 = vld [vmem:[#allocation13] sm:$0x1]  ;;  %v142_v19 = vld [vmem:[#allocation13 + $0x1] sm:$0x1] }
  0x1d   :  { %230 = vmatpush.bf16.msra.mxu3 %v445_v4  ;;  %162 = vmatpush.bf16.msra.mxu1 %v441_v7  ;;  %v174_v26 = vld [vmem:[#allocation13 + $0x2] sm:$0x1]  ;;  %v201_v49 = vld [vmem:[#allocation13 + $0x3] sm:$0x1] }
  0x1e   :  { %v100_v15 = vpack.c.bf16 %v99_v12, %v99_v12 }
  0x20   :  { %259 = vmatpush.bf16.msrb.mxu0 %v448_v9  ;;  %418 = vmatmul.msk.bf16.vlgmr.msra.gmra.mxu3 %vm118_vm0, %v203_v13 }
  0x21   :  { %332 = vmatpush.bf16.msrb.mxu1 %v450_v11  ;;  %391 = vmatmul.msk.bf16.vlgmr.msra.gmra.mxu0 %vm118_vm0, %v100_v15 }
  0x22   :  { %400 = vmatmul.msk.bf16.vlgmr.msra.gmra.mxu1 %vm118_vm0, %v100_v15  ;;  %194 = vmatpush.bf16.msra.mxu2 %v443_v14 }
  0x24   :  { %260 = vmatpush.bf16.msrb.mxu0 %v447_v16 }
  0x25   :  { %333 = vmatpush.bf16.msrb.mxu1 %v449_v17  ;;  %409 = vmatmul.msk.bf16.vlgmr.msra.gmra.mxu2 %vm118_vm0, %v100_v15 }
  0x31   :  { %427 = vmatmul.msk.bf16.vlgmr.msrb.gmra.mxu0 %vm118_vm0, %v203_v13 }
  0x32   :  { %438 = vmatmul.msk.bf16.vlgmr.msrb.gmra.mxu1 %vm118_vm0, %v203_v13 }
  0x9e   :  { %v131_v20 = vpop.f32.mrf.mxu0 }
  0x9f   :  { %v132_v21 = vadd.f32 %v131_v20, %v105_v18  ;;  %v164_v22 = vpop.f32.mrf.mxu1 }
  0xa0   :  { %v165_v23 = vadd.f32 %v164_v22, %v142_v19 }
  0xa1   :  { %136 = vst.msk [vmem:[#allocation2] sm:$0x1] %vm135_vm1, %v132_v21 }
  0xa2   :  { %168 = vst.msk [vmem:[#allocation3] sm:$0x1] %vm135_vm1, %v165_v23 }
  0xa3   :  { %v232_v24 = vpop.f32.mrf.mxu3 }
  0xa6   :  { %v133_v25 = vpop.f32.mrf.mxu0 }
  0xa7   :  { %v166_v27 = vpop.f32.mrf.mxu1 }
  0xa8   :  { %v271_v28 = vld [vmem:[#allocation2] sm:$0x1]  ;;  %v196_v29 = vpop.f32.mrf.mxu2 }
  0xa9   :  { %v272_v30 = vadd.f32 %v271_v28, %v232_v24  ;;  %v197_v31 = vadd.f32 %v196_v29, %v174_v26  ;;  %v292_v34 = vld [vmem:[#allocation3] sm:$0x1] }
  0xab   :  { %v428_v32 = vmul.f32 -1.442695, %v272_v30  ;;  %200 = vst.msk [vmem:[#allocation4] sm:$0x1] %vm135_vm1, %v197_v31  ;;  %v234_v33 = vpop.f32.mrf.mxu3 }
  0xad   :  { %460 = vpow2.f32 %v428_v32 }
  0xae   :  { %v262_v35 = vpop.f32.mrf.mxu0 }
  0xaf   :  { %v293_v36 = vadd.f32 %v292_v34, %v262_v35  ;;  %v335_v37 = vpop.f32.mrf.mxu1 }
  0xb0   :  { %v198_v38 = vpop.f32.mrf.mxu2  ;;  %v336_v56 = vadd.f32 %v335_v37, %v201_v49 }
  0xb1   :  { %v429_v39 = vmul.f32 -1.442695, %v293_v36 }
  0xb2   :  { %v313_v61 = vld [vmem:[#allocation4] sm:$0x1] }
  0xb3   :  { %v461_v40 = vpop.eup %460  ;;  %462 = vpow2.f32 %v429_v39 }
  0xb4   :  { %v276_v41 = vadd.f32 1.0, %v461_v40 }
  0xb6   :  { %464 = vrcp.f32 %v276_v41  ;;  %v264_v42 = vpop.f32.mrf.mxu0  ;;  %v288_v50 = vand.u32 2147483648, %v276_v41  ;;  %v286_v52 = vand.u32 2147483647, %v276_v41  ;;  %vm282_vm3 = vweird.f32 %v276_v41 }
  0xb7   :  { %v337_v43 = vpop.f32.mrf.mxu1 }
  0xb8   :  { %v289_v57 = vor.u32 1.1754944e-38, %v288_v50  ;;  %vm287_vm5 = vcmp.eq.f32.partialorder %v286_v52, 8.507059e+37 }
  0xb9   :  { %v463_v44 = vpop.eup %462 }
  0xba   :  { %v297_v45 = vadd.f32 1.0, %v463_v44 }
  0xbc   :  { %v465_v46 = vpop.eup %464  ;;  %466 = vrcp.f32 %v297_v45  ;;  %v309_v63 = vand.u32 2147483648, %v297_v45  ;;  %v307_v1 = vand.u32 2147483647, %v297_v45  ;;  %vm303_vm7 = vweird.f32 %v297_v45 }
  0xbd   :  { %v278_v47 = vmul.f32 %v465_v46, %v276_v41  ;;  %vm283_vm2 = vweird.f32 %v465_v46 }
  0xbe   :  { %vm284_vm4 = vmor %vm282_vm3, %vm283_vm2  ;;  %v310_v5 = vor.u32 1.1754944e-38, %v309_v63  ;;  %vm308_vm9 = vcmp.eq.f32.partialorder %v307_v1, 8.507059e+37 }
  0xbf   :  { %v279_v48 = vsub.f32 1.0, %v278_v47 }
  0xc1   :  { %v280_v51 = vmul.f32 %v465_v46, %v279_v48 }
  0xc2   :  { %v467_v53 = vpop.eup %466 }
  0xc3   :  { %v299_v54 = vmul.f32 %v467_v53, %v297_v45  ;;  %v281_v55 = vadd.f32 %v465_v46, %v280_v51  ;;  %vm304_vm6 = vweird.f32 %v467_v53 }
  0xc4   :  { %vm305_vm8 = vmor %vm303_vm7, %vm304_vm6 }
  0xc5   :  { %v300_v58 = vsub.f32 1.0, %v299_v54  ;;  %v285_v59 = vsel %vm284_vm4, %v465_v46, %v281_v55 }
  0xc6   :  { %v290_v60 = vsel %vm287_vm5, %v289_v57, %v285_v59 }
  0xc7   :  { %v301_v62 = vmul.f32 %v467_v53, %v300_v58  ;;  %v339_v0 = vmul.f32 %v336_v56, %v290_v60 }
  0xc9   :  { %v340_v2 = vadd.f32 %v339_v0, %v313_v61  ;;  %v302_v3 = vadd.f32 %v467_v53, %v301_v62 }
  0xcb   :  { %468 = vtanh.f32 %v340_v2  ;;  %v306_v4 = vsel %vm305_vm8, %v467_v53, %v302_v3 }
  0xcc   :  { %v311_v7 = vsel %vm308_vm9, %v310_v5, %v306_v4 }
  0xcd   :  { %v342_v8 = vsub.f32 1.0, %v311_v7  ;;  %v344_v11 = vmul.f32 %v311_v7, %v707_v6 }
  0xd1   :  { %v469_v9 = vpop.eup %468 }
  0xd2   :  { %v343_v10 = vmul.f32 %v469_v9, %v342_v8 }
  0xd4   :  { %v345_v12 = vadd.f32 %v344_v11, %v343_v10 }
  0xd6   :  { %346 = vst.msk [vmem:[#allocation14] sm:$0x1] %vm135_vm1, %v345_v12 }
  0xd7   :  { %358 = dma.vmem_to_hbm [thread:$0]  %s354_s4, 16, %s356_s23, [#allocation7]   ;;  %347 = vst.msk [vmem:[#allocation15] sm:$0x1] %vm135_vm1, %v345_v12 }
  0xd8   :  { %369 = dma.vmem_to_hbm [thread:$0]  %s365_s25, 16, %s367_s28, [#allocation16]  }
  0xd9   :  { %644 = dma.done.wait [#allocation7], 16  }
  0xda   :  { %645 = vsyncadd [#allocation7], 4294967280 }
  0xdb   :  { %646 = dma.done.wait [#allocation16], 16  }
  0xdc   :  { %647 = vsyncadd [#allocation16], 4294967280 }
  0xdd   :  { %378 = vsyncpa [#allocation6], 1 }
  0xde   :  { %379 = vsyncpa [#allocation9], 1 }
  0xdf   :  { %380 = vsyncpa [#allocation12], 1 }
  0xe0   :  { %381 = vsyncpa [#allocation7], 1 }
  0xe1   :  { %382 = vsyncpa [#allocation16], 1 }

</bundles_post_ra>
